<compile_context>
chip_gen: v6e
topology: v6e:2x2x1
jax: 0.10.0
libtpu: 0.0.40
codegen_flags: <defaults>
</compile_context>

<pallas_src>
import functools

import jax
import jax.numpy as jnp
from jax.experimental import pallas as pl
from jax.experimental.pallas import tpu as pltpu

EPS = 1e-6


def _residual_avg_extra_kernel(
    x_ref,      # (Bt, N, Cin)  VMEM  input features (streamed)
    w_ref,      # (Bt, N, N)    VMEM  pairwise averaging weights (streamed)
    pb_ref,     # (Bt, N, Cm)   VMEM  precomputed  p @ Wp + b  (streamed)
    win_x_ref,  # (Cin, Cm)     VMEM  AverageExtra x-weight (transposed), resident
    w_out_ref,  # (Cm, Cin)     VMEM  Average weight (transposed), resident
    o_ref,      # (Bt, N, Cin)  VMEM  output
    *,
    matmul_dtype,
):
    x = x_ref[...]                                        # (Bt, N, Cin) f32
    w = w_ref[...]                                        # (Bt, N, N)   f32
    bt, n, cin = x.shape
    cm = pb_ref.shape[-1]

    # Row-normalize the averaging weights once; reuse for both averaging matmuls.
    wsum = jnp.sum(w, axis=-1, keepdims=True)             # (Bt, N, 1)
    inv = pl.reciprocal(wsum + EPS)                       # exact (approx=True -> EUP)
    wn = (w * inv).astype(matmul_dtype)                   # (Bt, N, N)

    # ---- avg_in : AverageExtra(n_in, n_middle, n_extra, bias=True) -------------
    xa = jnp.einsum("bij,bjc->bic", wn, x.astype(matmul_dtype),
                    preferred_element_type=jnp.float32)   # (Bt, N, Cin)
    # Dense matmul flattened over Bt*N rows (sublane-dense, 128-row MXU tile).
    h = jnp.dot(xa.reshape(bt * n, cin).astype(matmul_dtype),
                win_x_ref[...].astype(matmul_dtype),
                preferred_element_type=jnp.float32)       # (Bt*N, Cm)
    h = h.reshape(bt, n, cm) + pb_ref[...]                # + (p @ Wp + b), precomputed

    # ---- activation : relu6_tanh ------------------------------------------------
    h = jnp.tanh(jnp.clip(h, 0.0, 6.0))

    # ---- avg_out : Average(n_middle, n_in, bias=False) ---------------------------
    ha = jnp.einsum("bij,bjc->bic", wn, h.astype(matmul_dtype),
                    preferred_element_type=jnp.float32)   # (Bt, N, Cm)
    y = jnp.dot(ha.reshape(bt * n, cm).astype(matmul_dtype),
                w_out_ref[...].astype(matmul_dtype),
                preferred_element_type=jnp.float32)       # (Bt*N, Cin)

    # ---- residual -----------------------------------------------------------------
    o_ref[...] = (x + y.reshape(bt, n, cin)).astype(o_ref.dtype)


def _pick_block_b(B, N, target_rows=128):
    """Largest divisor of B with block_b*N ~= target_rows, keeping >= 2 grid steps."""
    bt = max(1, min(B, target_rows // max(N, 1)))
    while bt > 1 and B % bt:
        bt -= 1
    # Keep at least 2 grid steps so both v7x TensorCores get work.
    while bt > 1 and B // bt < 2:
        bt -= 1
        while bt > 1 and B % bt:
            bt -= 1
    return max(bt, 1)


@functools.partial(jax.jit, static_argnames=("block_b", "matmul_dtype"))
def residual_average_extra_block(x, w, p, win_x, win_p, b_in, w_out,
                                 block_b=None, matmul_dtype=jnp.float32):
    """x: (B,N,Cin)  w: (B,N,N)  p: (B,N,Cx)  ->  (B,N,Cin)."""
    B, N, Cin = x.shape
    Cm = win_x.shape[-1]

    # Fuse the extra path + bias once, outside the kernel, as a single XLA matmul.
    pb = (p @ win_p + b_in).astype(jnp.float32)           # (B, N, Cm)

    if block_b is None:
        block_b = _pick_block_b(B, N)
    assert B % block_b == 0, "batch must be divisible by block_b"

    kernel = functools.partial(_residual_avg_extra_kernel, matmul_dtype=matmul_dtype)

    return pl.pallas_call(
        kernel,
        out_shape=jax.ShapeDtypeStruct((B, N, Cin), x.dtype),
        grid=(B // block_b,),
        in_specs=[
            pl.BlockSpec((block_b, N, Cin), lambda b: (b, 0, 0)),
            pl.BlockSpec((block_b, N, N), lambda b: (b, 0, 0)),
            pl.BlockSpec((block_b, N, Cm), lambda b: (b, 0, 0)),
            pl.BlockSpec((Cin, Cm), lambda b: (0, 0)),     # resident weight
            pl.BlockSpec((Cm, Cin), lambda b: (0, 0)),     # resident weight
        ],
        out_specs=pl.BlockSpec((block_b, N, Cin), lambda b: (b, 0, 0)),
        compiler_params=pltpu.CompilerParams(
            dimension_semantics=("parallel",)),
    )(x, w, pb, win_x, w_out)


def _reference(x, w, p, win_x, win_p, b_in, w_out):
    inv = 1.0 / (jnp.sum(w, axis=-1, keepdims=True) + EPS)
    xa = jnp.einsum("bij,bjc->bic", w, x) * inv
    h = xa @ win_x + p @ win_p + b_in
    h = jnp.tanh(jnp.clip(h, 0.0, 6.0))
    ha = jnp.einsum("bij,bjc->bic", w, h) * inv
    return x + ha @ w_out


if __name__ == "__main__":
    # Small deterministic problem: batch=16 (-> Bt=8, grid of 2 parallel steps),
    # set size N=16, n_in=32, n_middle=64, n_extra=8.
    B, N = 16, 16
    n_in, n_middle, n_extra = 32, 64, 8

    key = jax.random.PRNGKey(0)
    kx, kw, kp, k1, k2, k3, k4 = jax.random.split(key, 7)

    x = jax.random.normal(kx, (B, N, n_in), dtype=jnp.float32)
    w = jax.random.uniform(kw, (B, N, N), dtype=jnp.float32)      # non-negative averaging weights
    p = jax.random.normal(kp, (B, N, n_extra), dtype=jnp.float32)

    # Deterministic parameter init (PyTorch-Linear-like uniform(-1/sqrt(fan_in), 1/sqrt(fan_in))).
    fan_in_avg_in = n_in + n_extra
    lim_in = 1.0 / jnp.sqrt(jnp.float32(fan_in_avg_in))
    lim_out = 1.0 / jnp.sqrt(jnp.float32(n_middle))
    # Stored already transposed to (in, out) so the kernel does plain x @ W.
    win_x = jax.random.uniform(k1, (n_in, n_middle), jnp.float32, -lim_in, lim_in)
    win_p = jax.random.uniform(k2, (n_extra, n_middle), jnp.float32, -lim_in, lim_in)
    b_in = jax.random.uniform(k3, (1, n_middle), jnp.float32, -lim_in, lim_in)
    w_out = jax.random.uniform(k4, (n_middle, n_in), jnp.float32, -lim_out, lim_out)

    ref = _reference(x, w, p, win_x, win_p, b_in, w_out)

    # f32 MXU path — matches the f32 reference tightly.
    out = residual_average_extra_block(x, w, p, win_x, win_p, b_in, w_out)
    out = jax.block_until_ready(out)
    assert out.shape == (B, N, n_in)
    assert jnp.allclose(out, ref, atol=1e-5, rtol=1e-5), "f32 Pallas kernel mismatch vs reference"

    # bf16 MXU-operand path (f32 accumulation) — recommended on v6e/v7x; looser tolerance.
    out_bf16 = residual_average_extra_block(
        x, w, p, win_x, win_p, b_in, w_out, matmul_dtype=jnp.bfloat16)
    out_bf16 = jax.block_until_ready(out_bf16)
    assert jnp.allclose(out_bf16, ref, atol=5e-2, rtol=5e-2), "bf16 Pallas kernel mismatch vs reference"

    print("KERNEL_OK")
</pallas_src>

<mosaic_0001>
module attributes {stable_mosaic.version = 11 : i64} {
  func.func @_residual_avg_extra_kernel(%arg0: i32, %arg1: memref<8x16x32xf32, #tpu.memory_space<vmem>>, %arg2: memref<8x16x16xf32, #tpu.memory_space<vmem>>, %arg3: memref<8x16x64xf32, #tpu.memory_space<vmem>>, %arg4: memref<32x64xf32, #tpu.memory_space<vmem>>, %arg5: memref<64x32xf32, #tpu.memory_space<vmem>>, %arg6: memref<8x16x32xf32, #tpu.memory_space<vmem>>) attributes {dimension_semantics = [#tpu.dimension_semantics<parallel>], iteration_bounds = array<i64: 2>, scalar_prefetch = 0 : i64, scratch_operands = 0 : i64, tpu.core_type = #tpu.core_type<tc>, window_params = [{transform_indices = @transform_0, window_bounds = array<i64: 8, 16, 32>}, {transform_indices = @transform_1, window_bounds = array<i64: 8, 16, 16>}, {transform_indices = @transform_2, window_bounds = array<i64: 8, 16, 64>}, {pipeline_mode = #tpu.pipeline_mode<synchronous>, transform_indices = @transform_3, window_bounds = array<i64: 32, 64>}, {pipeline_mode = #tpu.pipeline_mode<synchronous>, transform_indices = @transform_4, window_bounds = array<i64: 64, 32>}, {transform_indices = @transform_5, window_bounds = array<i64: 8, 16, 32>}]} {
    %c0 = arith.constant 0 : index
    %c0_0 = arith.constant 0 : index
    %c0_1 = arith.constant 0 : index
    %0 = vector.load %arg1[%c0, %c0_0, %c0_1] : memref<8x16x32xf32, #tpu.memory_space<vmem>>, vector<8x16x32xf32>
    %c0_2 = arith.constant 0 : index
    %c0_3 = arith.constant 0 : index
    %c0_4 = arith.constant 0 : index
    %1 = vector.load %arg2[%c0_2, %c0_3, %c0_4] : memref<8x16x16xf32, #tpu.memory_space<vmem>>, vector<8x16x16xf32>
    %cst = arith.constant dense<0.000000e+00> : vector<8x16xf32>
    %2 = vector.multi_reduction <add>, %1, %cst [2] : vector<8x16x16xf32> to vector<8x16xf32>
    %3 = vector.shape_cast %2 : vector<8x16xf32> to vector<8x16x1xf32>
    %cst_5 = arith.constant 9.99999997E-7 : f32
    %4 = vector.broadcast %cst_5 : f32 to vector<8x16x1xf32>
    %5 = arith.addf %3, %4 : vector<8x16x1xf32>
    %6 = tpu.reciprocal %5 : vector<8x16x1xf32> -> vector<8x16x1xf32>
    %7 = vector.broadcast %6 : vector<8x16x1xf32> to vector<8x16x16xf32>
    %8 = arith.mulf %1, %7 : vector<8x16x16xf32>
    "tpu.trace_start"() <{level = 10 : i32, message = "bij,bjc->bic"}> : () -> ()
    %cst_6 = arith.constant dense<0.000000e+00> : vector<8x16x32xf32>
    %9 = tpu.matmul %8, %0, %cst_6 {dimension_numbers = #tpu.dot_dimension_numbers<[2], [1], [1], [2], [0, 0, 0, 1, 1, 2], [0], [0]>} : vector<8x16x16xf32>, vector<8x16x32xf32>, vector<8x16x32xf32> -> vector<8x16x32xf32>
    "tpu.trace_stop"() : () -> ()
    %10 = vector.shape_cast %9 : vector<8x16x32xf32> to vector<128x32xf32>
    %c0_7 = arith.constant 0 : index
    %c0_8 = arith.constant 0 : index
    %11 = vector.load %arg4[%c0_7, %c0_8] : memref<32x64xf32, #tpu.memory_space<vmem>>, vector<32x64xf32>
    %cst_9 = arith.constant dense<0.000000e+00> : vector<128x64xf32>
    %12 = tpu.matmul %10, %11, %cst_9 {dimension_numbers = #tpu.dot_dimension_numbers<[1], [0], [0], [1], [0, 0, 1, 1], [], []>} : vector<128x32xf32>, vector<32x64xf32>, vector<128x64xf32> -> vector<128x64xf32>
    %13 = vector.shape_cast %12 : vector<128x64xf32> to vector<8x16x64xf32>
    %c0_10 = arith.constant 0 : index
    %c0_11 = arith.constant 0 : index
    %c0_12 = arith.constant 0 : index
    %14 = vector.load %arg3[%c0_10, %c0_11, %c0_12] : memref<8x16x64xf32, #tpu.memory_space<vmem>>, vector<8x16x64xf32>
    %15 = arith.addf %13, %14 : vector<8x16x64xf32>
    %cst_13 = arith.constant 0.000000e+00 : f32
    %cst_14 = arith.constant 6.000000e+00 : f32
    %16 = vector.broadcast %cst_13 : f32 to vector<8x16x64xf32>
    %17 = arith.maximumf %16, %15 : vector<8x16x64xf32>
    %18 = vector.broadcast %cst_14 : f32 to vector<8x16x64xf32>
    %19 = arith.minimumf %18, %17 : vector<8x16x64xf32>
    %20 = math.tanh %19 : vector<8x16x64xf32>
    "tpu.trace_start"() <{level = 10 : i32, message = "bij,bjc->bic"}> : () -> ()
    %cst_15 = arith.constant dense<0.000000e+00> : vector<8x16x64xf32>
    %21 = tpu.matmul %8, %20, %cst_15 {dimension_numbers = #tpu.dot_dimension_numbers<[2], [1], [1], [2], [0, 0, 0, 1, 1, 2], [0], [0]>} : vector<8x16x16xf32>, vector<8x16x64xf32>, vector<8x16x64xf32> -> vector<8x16x64xf32>
    "tpu.trace_stop"() : () -> ()
    %22 = vector.shape_cast %21 : vector<8x16x64xf32> to vector<128x64xf32>
    %c0_16 = arith.constant 0 : index
    %c0_17 = arith.constant 0 : index
    %23 = vector.load %arg5[%c0_16, %c0_17] : memref<64x32xf32, #tpu.memory_space<vmem>>, vector<64x32xf32>
    %cst_18 = arith.constant dense<0.000000e+00> : vector<128x32xf32>
    %24 = tpu.matmul %22, %23, %cst_18 {dimension_numbers = #tpu.dot_dimension_numbers<[1], [0], [0], [1], [0, 0, 1, 1], [], []>} : vector<128x64xf32>, vector<64x32xf32>, vector<128x32xf32> -> vector<128x32xf32>
    %25 = vector.shape_cast %24 : vector<128x32xf32> to vector<8x16x32xf32>
    %26 = arith.addf %0, %25 : vector<8x16x32xf32>
    %c0_19 = arith.constant 0 : index
    %c0_20 = arith.constant 0 : index
    %c0_21 = arith.constant 0 : index
    %27 = vector.load %arg6[%c0_19, %c0_20, %c0_21] : memref<8x16x32xf32, #tpu.memory_space<vmem>>, vector<8x16x32xf32>
    tpu.vector_store %arg6[%c0_19, %c0_20, %c0_21], %26 {strides = array<i32>} : memref<8x16x32xf32, #tpu.memory_space<vmem>>, vector<8x16x32xf32>,
    return
  }
  func.func @transform_0(%arg0: i32) -> (i32, i32, i32) {
    %c0_i32 = arith.constant 0 : i32
    %c0_i32_0 = arith.constant 0 : i32
    %c0_i32_1 = arith.constant 0 : i32
    return %arg0, %c0_i32, %c0_i32_0 : i32, i32, i32
  }
  func.func @transform_1(%arg0: i32) -> (i32, i32, i32) {
    %c0_i32 = arith.constant 0 : i32
    %c0_i32_0 = arith.constant 0 : i32
    %c0_i32_1 = arith.constant 0 : i32
    return %arg0, %c0_i32, %c0_i32_0 : i32, i32, i32
  }
  func.func @transform_2(%arg0: i32) -> (i32, i32, i32) {
    %c0_i32 = arith.constant 0 : i32
    %c0_i32_0 = arith.constant 0 : i32
    %c0_i32_1 = arith.constant 0 : i32
    return %arg0, %c0_i32, %c0_i32_0 : i32, i32, i32
  }
  func.func @transform_3(%arg0: i32) -> (i32, i32) {
    %c0_i32 = arith.constant 0 : i32
    %c0_i32_0 = arith.constant 0 : i32
    %c0_i32_1 = arith.constant 0 : i32
    return %c0_i32, %c0_i32_0 : i32, i32
  }
  func.func @transform_4(%arg0: i32) -> (i32, i32) {
    %c0_i32 = arith.constant 0 : i32
    %c0_i32_0 = arith.constant 0 : i32
    %c0_i32_1 = arith.constant 0 : i32
    return %c0_i32, %c0_i32_0 : i32, i32
  }
  func.func @transform_5(%arg0: i32) -> (i32, i32, i32) {
    %c0_i32 = arith.constant 0 : i32
    %c0_i32_0 = arith.constant 0 : i32
    %c0_i32_1 = arith.constant 0 : i32
    return %arg0, %c0_i32, %c0_i32_0 : i32, i32, i32
  }
}

</mosaic_0001>

<bundles_post_ra>
// kernel: residual_average_extra_block.1
= control target key start
LH: loop header
LB: loop body
LE: loop exit
PB: predicated region body
PF: predicated region fallthrough
CT: control target
= control target key end

     0   :  { %10 = vsyncpa [#allocation3], 0  ;;  %s3518_s0 = inlined_call_operand.vmem [shape: f32[16,16,32], index: 0, kind: input, shape index: {}]   ;;  %s3519_s1 = inlined_call_operand.hbm [shape: f32[16,16,16], index: 1, kind: input, shape index: {}]   ;;  %s3520_s2 = inlined_call_operand.vmem [shape: f32[16,16,64], index: 2, kind: input, shape index: {}]   ;;  %s3521_s3 = inlined_call_operand.vmem [shape: f32[32,64], index: 3, kind: input, shape index: {}]   ;;  %s3522_s4 = inlined_call_operand.vmem [shape: f32[64,32], index: 4, kind: input, shape index: {}]   ;;  %s3523_s5 = inlined_call_operand.hbm [shape: f32[16,16,32], index: 5, kind: output, shape index: {}]  }
   0x1   :  { %12 = vsyncpa [#allocation3 + $0x1], 0 }
   0x2   :  { %13 = vsyncpa [#allocation4], 0 }
   0x3   :  { %15 = vsyncpa [#allocation4 + $0x1], 0  ;;  %s2933_s18 = smov 0   ;;  %s2935_s19 = smov 0  }
   0x4   :  { %s2937_s20 = smov 0   ;;  %s2939_s21 = smov 0  }
   0x5 LB: > { %s2954_s22 = sadd.s32 4294967295, %s2895_s21   ;;  %s2297_s23 = sadd.s32 4294967294, %s2895_s21   ;;  %s2895_s21 = sphi %s2939_s21, %s3538_s21   ;;  %s2891_s20 = sphi %s2937_s20, %s3537_s20   ;;  %s2887_s19 = sphi %s2935_s19, %s3536_s19   ;;  %s2883_s18 = sphi %s2933_s18, %s3535_s18  }
   0x6   : > { %s2958_s24 = sadd.s32 1, %s2895_s21   ;;  %s54_s25 = sadd.s32 1, %s2891_s20 }
   0x7   : > { %s51_s26 = ssub.s32 %s2895_s21, %s2958_s24  ;;  %p61_p0 = scmp.ne.s32.totalorder %s2891_s20, %s2887_s19 }
   0x8   : > { %p52_p1 = scmp.eq.s32.totalorder %s51_s26, 0  ;;  %p62_p2 = scmp.eq.s32.totalorder %s2895_s21, 0 }
   0x9   : > { %p67_p3 = scmp.ne.s32.totalorder %s2887_s19, %s2883_s18  ;;  %p68_p4 = scmp.eq.s32.totalorder %s2954_s22, 0 }
   0xa   : > { %s2970_s27 = scalar_select %p52_p1, %s2891_s20, %s54_s25  }
   0xb   : > { %p2972_p5 = por %p62_p2, %p61_p0  ;;  %p2976_p6 = por %p68_p4, %p67_p3 }
   0xc   : > { %p159_p7 = scmp.eq.s32.totalorder %s2954_s22, 1  ;;  %p165_p8 = scmp.eq.s32.totalorder %s2297_s23, 1 }
   0xd   : > { %s3527_s29 = scalar_select %p2976_p6, 1, 0 }
   0xe   : > { %p2701_p10 = scmp.lt.s32.totalorder %s2895_s21, 2  ;;  %p2983_p11 = por %p159_p7, %p61_p0 }
   0xf   : > { %p2987_p12 = por %p165_p8, %p67_p3  ;;  %s201_s7 = sand.u32 1, %s2891_s20  }
  0x10   : > { %s3528_s30 = scalar_select %p2983_p11, 1, 0 }
  0x11   : > { %s3529_s6 = scalar_select %p2987_p12, 1, 0 }
  0x12   : > { %s2384_s8 = sshll.u32 %s2895_s21, 11  ;;  %s2300_s9 = sshll.u32 %s201_s7, 7 }
  0x13   : > { %s2996_s12 = scalar_lea.hbm %s3519_s1, %s2384_s8  ;;  %s205_s13 = scalar_lea.vmem [#allocation2], %s2300_s9 }
  0x14   : > { %s213_s14 = sshll.u32 %s205_s13, 4  ;;  %p3000_p13 = pnand %p2701_p10, %p2972_p5  ;;  %s3004_s14 = int_to_ptr.vmem [resolvable:$true] %s213_s14 }
  0x15   : > { %s3006_s16 = scalar_lea.sflag [#allocation3], %s201_s7  ;;  %s2803_s17 = scalar_lea.hbm %s2996_s12, 2048 }
  0x16   : > { %p2804_p0 = scmp.ne.s32.totalorder %s2996_s12, %s2803_s17  ;;  %p2805_p1 = pneg %p3000_p13 }
  0x17   : > { %s2808_s26 = scalar_lea.hbm %s3519_s1, 4096  ;;  %p2809_p4 = scmp.lt.s32.totalorder %s2996_s12, %s3519_s1 }
  0x18   : > { %p2806_p2 = pnand %p2805_p1, %p2804_p0  ;;  %p2810_p5 = scmp.lt.s32.totalorder %s2808_s26, %s2803_s17 }
  0x1a   : > { %p2807_p3 = pneg %p2806_p2  ;;  %p2811_p7 = por %p2810_p5, %p2809_p4 }
  0x1c   : > { %p2812_p8 = pnand %p2811_p7, %p2807_p3 }
  0x1e   : > { %2815 = shalt.err (!%p2812_p8)
}
  0x1f   : > { %s2816_s7 = scalar_lea.vmem %s3004_s14, 2048  ;;  %s2897_s9 = smov [#allocation2]  }
  0x20   : > { %p2817_p10 = scmp.ne.s32.totalorder %s3004_s14, %s2816_s7  ;;  %s2821_s10 = sshll.u32 %s2897_s9, 4  ;;  %s2822_s10 = int_to_ptr.vmem [resolvable:$false] %s2821_s10 }
  0x21   : > { %s2823_s11 = scalar_lea.vmem %s2822_s10, 4096  ;;  %p2824_p2 = scmp.lt.s32.totalorder %s3004_s14, %s2822_s10 }
  0x22   : > { %p2819_p9 = pnand %p2817_p10, %p2805_p1  ;;  %p2825_p12 = scmp.lt.s32.totalorder %s2823_s11, %s2816_s7 }
  0x24   : > { %p2820_p0 = pneg %p2819_p9  ;;  %p2826_p11 = por %p2825_p12, %p2824_p2 }
  0x26   : > { %p2827_p6 = pnand %p2826_p11, %p2820_p0 }
  0x28   : > { %2830 = shalt.err (!%p2827_p6)
}
  0x29   : > { %s2898_s13 = smov 128   ;;  %s2899_s17 = smov 8  }
  0x2a   : > { %2696 = dma.hbm_to_vmem [thread:$0]  (!%p3000_p13), %s2996_s12, 2048, %s3004_s14, %s3006_s16, %s2898_s13, %s2898_s13, %s2899_s17  }
  0x2b   : > { %p2304_p9 = scmp.ge.s32.totalorder %s2895_s21, 1  ;;  %p231_p1 = scmp.lt.s32.totalorder %s2895_s21, 3 }
  0x2d   : > { %p232_p3 = pnand %p2304_p9, %p231_p1 }
  0x2e   : > { %s3030_s23 = sand.u32 (!%p232_p3), 1, %s2887_s19   ;;  %p3531_p6 = scmp.ne.s32.totalorder (!%p232_p3), %s3527_s29, 0 }
  0x2f   : > { %235 = sbr.rel (%p232_p3) target bundleno = 1063 (0x427), region = 40  ;;  %s2305_s25 = sshll.u32 (!%p232_p3), %s3030_s23, 7 }
  0x30   : > { %s238_s26 = scalar_lea.sflag (!%p232_p3), [#allocation3], %s3030_s23  ;;  %s3036_s28 = scalar_lea.vmem (!%p232_p3), [#allocation2], %s2305_s25 }
  0x34   : > { %2874 = dma.done.wait (%p3531_p6), %s238_s26, 2048  }
  0x35   : > { %2876 = vsyncadd (%p3531_p6), %s238_s26, 4294965248  ;;  %vm328_vm0 = vcmask 130048   ;;  %v3043_v0 = vld [vmem:[%s3036_s28] sm:$0xff]  ;;  %v3046_v1 = vld [vmem:[%s3036_s28 + $0x10] sm:$0xff]  ;;  %s2307_s29 = sshll.u32 %s2954_s22, 3  ;;  %vm1077_vm1 = vcmask 261120  }
  0x36   : > { %v3049_v2 = vld [vmem:[%s3036_s28 + $0x8] sm:$0xff]  ;;  %v329_v3 = vsel %vm328_vm0, %v3043_v0, 0.0  ;;  %v335_v4 = vsel %vm328_vm0, %v3046_v1, 0.0  ;;  %v3056_v5 = vld [vmem:[%s3036_s28 + $0x18] sm:$0xff]  ;;  %v3063_v8 = vld [vmem:[%s3036_s28 + $0x20] sm:$0xff]  ;;  %p281_p11 = scmp.lt.s32.totalorder %s2307_s29, 15 }
  0x37   : > { %330 = vadd.xlane.f32.xlu0 %v329_v3  ;;  %336 = vadd.xlane.f32.xlu1 %v335_v4  ;;  %v332_v6 = vsel %vm328_vm0, %v3049_v2, 0.0  ;;  %v338_v7 = vsel %vm328_vm0, %v3056_v5, 0.0  ;;  %v3066_v9 = vld [vmem:[%s3036_s28 + $0x28] sm:$0xff]  ;;  %v341_v10 = vsel %vm328_vm0, %v3063_v8, 0.0  ;;  %v3073_v12 = vld [vmem:[%s3036_s28 + $0x30] sm:$0xff]  ;;  %v3076_v13 = vld [vmem:[%s3036_s28 + $0x38] sm:$0xff] }
  0x38   : > { %v344_v11 = vsel %vm328_vm0, %v3066_v9, 0.0  ;;  %v347_v14 = vsel %vm328_vm0, %v3073_v12, 0.0  ;;  %v350_v15 = vsel %vm328_vm0, %v3076_v13, 0.0  ;;  %v3083_v16 = vld [vmem:[%s3036_s28 + $0x40] sm:$0xff]  ;;  %v3086_v17 = vld [vmem:[%s3036_s28 + $0x48] sm:$0xff]  ;;  %v3093_v20 = vld [vmem:[%s3036_s28 + $0x50] sm:$0xff] }
  0x39   : > { %v353_v18 = vsel %vm328_vm0, %v3083_v16, 0.0  ;;  %v356_v19 = vsel %vm328_vm0, %v3086_v17, 0.0  ;;  %v3096_v21 = vld [vmem:[%s3036_s28 + $0x58] sm:$0xff]  ;;  %v359_v22 = vsel %vm328_vm0, %v3093_v20, 0.0  ;;  %v3103_v24 = vld [vmem:[%s3036_s28 + $0x60] sm:$0xff]  ;;  %v3106_v25 = vld [vmem:[%s3036_s28 + $0x68] sm:$0xff] }
  0x3a   : > { %v362_v23 = vsel %vm328_vm0, %v3096_v21, 0.0  ;;  %v365_v26 = vsel %vm328_vm0, %v3103_v24, 0.0  ;;  %v368_v27 = vsel %vm328_vm0, %v3106_v25, 0.0  ;;  %v3114_v28 = vld [vmem:[%s3036_s28 + $0x70] sm:$0xff]  ;;  %v3117_v29 = vld [vmem:[%s3036_s28 + $0x78] sm:$0xff]  ;;  %s3540_s29 = smov (!%p281_p11, %s2307_s29), 15 }
  0x3b   : > { %333 = vadd.xlane.f32.xlu0 %v332_v6  ;;  %339 = vadd.xlane.f32.xlu1 %v338_v7  ;;  %v371_v30 = vsel %vm328_vm0, %v3114_v28, 0.0  ;;  %v374_v31 = vsel %vm328_vm0, %v3117_v29, 0.0  ;;  %s2385_s12 = sshll.u32 %s3540_s29, 4  ;;  %vm1959_vm2 = vcmask 523264   ;;  %s3419_s7 = scalar_lea.vmem [#allocation5], %s2305_s25 }
  0x3c   : > { %s3131_s16 = scalar_lea.vmem %s3518_s0, %s2385_s12  ;;  %s3346_s15 = scalar_lea.vmem %s3520_s2, %s2385_s12 }
  0x3d   : > { %v3134_v32 = vld [vmem:[%s3131_s16 + $0x8] sm:$0xff]  ;;  %v3138_v33 = vld [vmem:[%s3131_s16] sm:$0xff]  ;;  %v3141_v34 = vld [vmem:[%s3131_s16 + $0x18] sm:$0xff]  ;;  %s2388_s25 = sshll.u32 %s2954_s22, 11  ;;  %s2200_s9 = sshll.u32 %s3419_s7, 4  ;;  %s3470_s9 = int_to_ptr.vmem [resolvable:$true] %s2200_s9 }
  0x3e   : > { %2497 = vmatprep.subr.mxu0 %v3134_v32  ;;  %2504 = vmatprep.subr.mxu1 %v3141_v34  ;;  %v3148_v35 = vld [vmem:[%s3131_s16 + $0x10] sm:$0xff]  ;;  %v3154_v36 = vld [vmem:[%s3131_s16 + $0x28] sm:$0xff]  ;;  %v3158_v37 = vld [vmem:[%s3131_s16 + $0x38] sm:$0xff]  ;;  %s3468_s13 = scalar_lea.hbm %s3523_s5, %s2388_s25  ;;  %s2186_s22 = scalar_lea.sflag [#allocation4], %s3030_s23 }
  0x3f   : > { %342 = vadd.xlane.f32.xlu0 %v341_v10  ;;  %345 = vadd.xlane.f32.xlu1 %v344_v11  ;;  %v3178_v10 = vld [vmem:[%s3131_s16 + $0x20] sm:$0xff]  ;;  %v3183_v11 = vld [vmem:[%s3131_s16 + $0x30] sm:$0xff]  ;;  %s2831_s17 = scalar_lea.vmem %s3470_s9, 2048  ;;  %p3532_p13 = scmp.ne.s32.totalorder %s3528_s30, 0 }
  0x40   : > { %2498 = vmatpush3.msra.mxu0 %v3134_v32  ;;  %2505 = vmatpush3.msra.mxu1 %v3141_v34  ;;  %p2832_p12 = scmp.ne.s32.totalorder %s3470_s9, %s2831_s17  ;;  %s2900_s26 = smov [#allocation5]  }
  0x41   : > { %2499 = vmatprep.subr.mxu0 %v3138_v33  ;;  %2506 = vmatprep.subr.mxu1 %v3148_v35  ;;  %s2835_s28 = sshll.u32 %s2900_s26, 4  ;;  %s2836_s28 = int_to_ptr.vmem [resolvable:$false] %s2835_s28 }
  0x42   : > { %2500 = vmatpush3.msra.mxu0 %v3138_v33  ;;  %2507 = vmatpush3.msra.mxu1 %v3148_v35  ;;  %p2833_p4 = pnand %p2832_p12, %p3532_p13  ;;  %s2837_s14 = scalar_lea.vmem %s2836_s28, 4096 }
  0x43   : > { %348 = vadd.xlane.f32.xlu0 %v347_v14  ;;  %351 = vadd.xlane.f32.xlu1 %v350_v15  ;;  %p2838_p7 = scmp.lt.s32.totalorder %s3470_s9, %s2836_s28  ;;  %p2839_p8 = scmp.lt.s32.totalorder %s2837_s14, %s2831_s17 }
  0x44   : > { %2511 = vmatprep.subr.mxu0 %v3154_v36  ;;  %2518 = vmatprep.subr.mxu1 %v3158_v37  ;;  %p2834_p5 = pneg %p2833_p4 }
  0x45   : > { %p2840_p10 = por %p2839_p8, %p2838_p7 }
  0x47   : > { %354 = vadd.xlane.f32.xlu0 %v353_v18  ;;  %357 = vadd.xlane.f32.xlu1 %v356_v19  ;;  %p2841_p0 = pnand %p2840_p10, %p2834_p5 }
  0x4b   : > { %360 = vadd.xlane.f32.xlu0 %v359_v22  ;;  %363 = vadd.xlane.f32.xlu1 %v362_v23 }
  0x4f   : > { %366 = vadd.xlane.f32.xlu0 %v365_v26  ;;  %369 = vadd.xlane.f32.xlu1 %v368_v27  ;;  %v3202_v27 = vld [vmem:[%s3131_s16 + $0x58] sm:$0xff] }
  0x53   : > { %372 = vadd.xlane.f32.xlu0 %v371_v30  ;;  %375 = vadd.xlane.f32.xlu1 %v374_v31 }
  0xc0   : > { %v331_v38 = vpop.xlane.xlu0 %330  ;;  %v337_v39 = vpop.xlane.xlu1 %336 }
  0xc1   : > { %v377_v40 = vadd.f32 1e-06, %v331_v38  ;;  %v379_v41 = vadd.f32 1e-06, %v337_v39 }
  0xc3   : > { %2739 = vrcp.f32 %v377_v40 }
  0xc4   : > { %2741 = vrcp.f32 %v379_v41  ;;  %v334_v42 = vpop.xlane.xlu0 %333  ;;  %v340_v43 = vpop.xlane.xlu1 %339 }
  0xc5   : > { %v378_v44 = vadd.f32 1e-06, %v334_v42  ;;  %v380_v45 = vadd.f32 1e-06, %v340_v43  ;;  %v3219_v42 = vld [vmem:[%s3131_s16 + $0x68] sm:$0xff] }
  0xc7   : > { %2743 = vrcp.f32 %v378_v44  ;;  %v3229_v44 = vld [vmem:[%s3131_s16 + $0x50] sm:$0xff] }
  0xc8   : > { %2745 = vrcp.f32 %v380_v45  ;;  %v343_v46 = vpop.xlane.xlu0 %342  ;;  %v346_v47 = vpop.xlane.xlu1 %345 }
  0xc9   : > { %v381_v48 = vadd.f32 1e-06, %v343_v46  ;;  %v382_v49 = vadd.f32 1e-06, %v346_v47  ;;  %v3239_v46 = vld [vmem:[%s3131_s16 + $0x78] sm:$0xff] }
  0xcb   : > { %2747 = vrcp.f32 %v381_v48  ;;  %v3249_v48 = vld [vmem:[%s3131_s16 + $0x60] sm:$0xff] }
  0xcc   : > { %2749 = vrcp.f32 %v382_v49  ;;  %v349_v50 = vpop.xlane.xlu0 %348  ;;  %v352_v51 = vpop.xlane.xlu1 %351 }
  0xcd   : > { %v383_v52 = vadd.f32 1e-06, %v349_v50  ;;  %v384_v53 = vadd.f32 1e-06, %v352_v51  ;;  %v1076_v50 = vld [vmem:[%s3521_s3 + $0x18] sm:$0xff] }
  0xcf   : > { %2751 = vrcp.f32 %v383_v52  ;;  %v3269_v52 = vld [vmem:[%s3131_s16 + $0x70] sm:$0xff] }
  0xd0   : > { %v2740_v54 = vpop.eup %2739  ;;  %2753 = vrcp.f32 %v384_v53  ;;  %v355_v55 = vpop.xlane.xlu0 %354 }
  0xd1   : > { %v358_v56 = vpop.xlane.xlu1 %357  ;;  %v2742_v57 = vpop.eup %2741  ;;  %v385_v58 = vadd.f32 1e-06, %v355_v55  ;;  %v3162_v60 = vmul.f32 %v2740_v54, %v3043_v0  ;;  %v1075_v55 = vld [vmem:[%s3521_s3 + $0x10] sm:$0xff] }
  0xd2   : > { %v386_v59 = vadd.f32 1e-06, %v358_v56  ;;  %v3165_v61 = vmul.f32 %v2742_v57, %v3046_v1 }
  0xd3   : > { %2755 = vrcp.f32 %v385_v58  ;;  %2501 = vmatprep.mubr.msk.f32.mxu0 %vm328_vm0, %v3162_v60 }
  0xd4   : > { %v2744_v62 = vpop.eup %2743  ;;  %2757 = vrcp.f32 %v386_v59  ;;  %v361_v63 = vpop.xlane.xlu0 %360  ;;  %2508 = vmatprep.mubr.msk.f32.mxu1 %vm328_vm0, %v3165_v61 }
  0xd5   : > { %v364_v3 = vpop.xlane.xlu1 %363  ;;  %v2746_v4 = vpop.eup %2745  ;;  %v387_v6 = vadd.f32 1e-06, %v361_v63  ;;  %v3172_v7 = vmul.f32 %v2744_v62, %v3049_v2  ;;  %v3189_v2 = vld [vmem:[%s3131_s16 + $0x48] sm:$0xff] }
  0xd6   : > { %v388_v0 = vadd.f32 1e-06, %v364_v3  ;;  %v3175_v1 = vmul.f32 %v2746_v4, %v3056_v5 }
  0xd7   : > { %2759 = vrcp.f32 %v387_v6  ;;  %2502 = vmatmul.mubr.msk.f32.vlgmr.msra.gmra.mxu0 %vm328_vm0, %v3172_v7 }
  0xd8   : > { %v2748_v14 = vpop.eup %2747  ;;  %2761 = vrcp.f32 %v388_v0  ;;  %v367_v15 = vpop.xlane.xlu0 %366  ;;  %2509 = vmatmul.mubr.msk.f32.vlgmr.msra.gmra.mxu1 %vm328_vm0, %v3175_v1  ;;  %2512 = vmatpush3.msra.mxu0 %v3154_v36 }
  0xd9   : > { %v370_v18 = vpop.xlane.xlu1 %369  ;;  %v2750_v5 = vpop.eup %2749  ;;  %v389_v19 = vadd.f32 1e-06, %v367_v15  ;;  %2513 = vmatprep.subr.mxu0 %v3178_v10  ;;  %v3193_v23 = vmul.f32 %v2748_v14, %v3063_v8  ;;  %2519 = vmatpush3.msra.mxu1 %v3158_v37  ;;  %v3208_v8 = vld [vmem:[%s3131_s16 + $0x40] sm:$0xff] }
  0xda   : > { %v390_v22 = vadd.f32 1e-06, %v370_v18  ;;  %2514 = vmatpush3.msra.mxu0 %v3178_v10  ;;  %v3198_v26 = vmul.f32 %v2750_v5, %v3066_v9  ;;  %2520 = vmatprep.subr.mxu1 %v3183_v11 }
  0xdb   : > { %2763 = vrcp.f32 %v389_v19  ;;  %2515 = vmatprep.mubr.msk.f32.mxu0 %vm328_vm0, %v3193_v23  ;;  %2525 = vmatprep.subr.mxu0 %v3189_v2 }
  0xdc   : > { %v2752_v30 = vpop.eup %2751  ;;  %2765 = vrcp.f32 %v390_v22  ;;  %v373_v31 = vpop.xlane.xlu0 %372  ;;  %2516 = vmatmul.mubr.msk.f32.vlgmr.msra.gmra.mxu0 %vm328_vm0, %v3198_v26  ;;  %2521 = vmatpush3.msra.mxu1 %v3183_v11 }
  0xdd   : > { %v376_v38 = vpop.xlane.xlu1 %375  ;;  %v2754_v9 = vpop.eup %2753  ;;  %v391_v39 = vadd.f32 1e-06, %v373_v31  ;;  %2526 = vmatpush3.msra.mxu0 %v3189_v2  ;;  %v3215_v41 = vmul.f32 %v2752_v30, %v3073_v12  ;;  %2532 = vmatprep.subr.mxu1 %v3202_v27 }
  0xde   : > { %v392_v40 = vadd.f32 1e-06, %v376_v38  ;;  %2527 = vmatprep.subr.mxu0 %v3208_v8  ;;  %v3223_v43 = vmul.f32 %v2754_v9, %v3076_v13  ;;  %v1958_v38 = vld [vmem:[%s3522_s4 + $0x38] sm:$0xff]  ;;  %v1957_v9 = vld [vmem:[%s3522_s4 + $0x30] sm:$0xff] }
  0xdf   : > { %2767 = vrcp.f32 %v391_v39  ;;  %2522 = vmatprep.mubr.msk.f32.mxu1 %vm328_vm0, %v3215_v41  ;;  %2528 = vmatpush3.msra.mxu0 %v3208_v8  ;;  %v1956_v39 = vld [vmem:[%s3522_s4 + $0x28] sm:$0xff] }
  0xe0   : > { %v2756_v12 = vpop.eup %2755  ;;  %2769 = vrcp.f32 %v392_v40  ;;  %2523 = vmatmul.mubr.msk.f32.vlgmr.msra.gmra.mxu1 %vm328_vm0, %v3223_v43  ;;  %2539 = vmatprep.subr.mxu0 %v3219_v42  ;;  %v1954_v40 = vld [vmem:[%s3522_s4 + $0x18] sm:$0xff] }
  0xe1   : > { %v2758_v45 = vpop.eup %2757  ;;  %v3235_v13 = vmul.f32 %v2756_v12, %v3083_v16  ;;  %2533 = vmatpush3.msra.mxu1 %v3202_v27  ;;  %v1953_v12 = vld [vmem:[%s3522_s4 + $0x10] sm:$0xff] }
  0xe2   : > { %v3242_v47 = vmul.f32 %v2758_v45, %v3086_v17  ;;  %2534 = vmatprep.subr.mxu1 %v3229_v44  ;;  %v1272_v45 = vld [vmem:[%s3346_s15 + $0x8] sm:$0xff] }
  0xe3   : > { %2529 = vmatprep.mubr.msk.f32.mxu0 %vm328_vm0, %v3235_v13  ;;  %2535 = vmatpush3.msra.mxu1 %v3229_v44 }
  0xe4   : > { %v2760_v49 = vpop.eup %2759  ;;  %2530 = vmatmul.mubr.msk.f32.vlgmr.msra.gmra.mxu0 %vm328_vm0, %v3242_v47  ;;  %2546 = vmatprep.subr.mxu1 %v3239_v46 }
  0xe5   : > { %v2762_v16 = vpop.eup %2761  ;;  %v3255_v17 = vmul.f32 %v2760_v49, %v3093_v20  ;;  %2540 = vmatpush3.msra.mxu0 %v3219_v42 }
  0xe6   : > { %v3262_v51 = vmul.f32 %v2762_v16, %v3096_v21  ;;  %2541 = vmatprep.subr.mxu0 %v3249_v48  ;;  %v1271_v16 = vld [vmem:[%s3346_s15] sm:$0xff] }
  0xe7   : > { %2536 = vmatprep.mubr.msk.f32.mxu1 %vm328_vm0, %v3255_v17  ;;  %2542 = vmatpush3.msra.mxu0 %v3249_v48 }
  0xe8   : > { %v2764_v20 = vpop.eup %2763  ;;  %2537 = vmatmul.mubr.msk.f32.vlgmr.msra.gmra.mxu1 %vm328_vm0, %v3262_v51  ;;  %2553 = vmatprep.subr.mxu0 %v1076_v50 }
  0xe9   : > { %v2766_v53 = vpop.eup %2765  ;;  %v3274_v54 = vmul.f32 %v2764_v20, %v3103_v24  ;;  %2547 = vmatpush3.msra.mxu1 %v3239_v46 }
  0xea   : > { %v3278_v21 = vmul.f32 %v2766_v53, %v3106_v25  ;;  %2548 = vmatprep.subr.mxu1 %v3269_v52  ;;  %v1274_v53 = vld [vmem:[%s3346_s15 + $0x18] sm:$0xff] }
  0xeb   : > { %2543 = vmatprep.mubr.msk.f32.mxu0 %vm328_vm0, %v3274_v54  ;;  %2549 = vmatpush3.msra.mxu1 %v3269_v52 }
  0xec   : > { %v2768_v56 = vpop.eup %2767  ;;  %2544 = vmatmul.mubr.msk.f32.vlgmr.msra.gmra.mxu0 %vm328_vm0, %v3278_v21  ;;  %2681 = vmatprep.subr.mxu1 %v1076_v50 }
  0xed   : > { %v2770_v24 = vpop.eup %2769  ;;  %v3290_v25 = vmul.f32 %v2768_v56, %v3114_v28  ;;  %2554 = vmatpush3.msra.mxu0 %v1076_v50  ;;  %v1074_v28 = vld [vmem:[%s3521_s3 + $0x8] sm:$0xff] }
  0xee   : > { %v3293_v57 = vmul.f32 %v2770_v24, %v3117_v29  ;;  %2555 = vmatprep.subr.mxu0 %v1075_v55  ;;  %v1073_v29 = vld [vmem:[%s3521_s3] sm:$0xff] }
  0xef   : > { %2550 = vmatprep.mubr.msk.f32.mxu1 %vm328_vm0, %v3290_v25  ;;  %2556 = vmatpush3.msra.mxu0 %v1075_v55 }
  0xf0   : > { %2551 = vmatmul.mubr.msk.f32.vlgmr.msra.gmra.mxu1 %vm328_vm0, %v3293_v57  ;;  %2557 = vmatprep.subr.mxu0 %v1074_v28 }
  0xf1   : > { %2685 = vmatpush3.msra.mxu1 %v1076_v50  ;;  %2558 = vmatpush3.msra.mxu0 %v1074_v28 }
  0xf2   : > { %2682 = vmatprep.subr.mxu1 %v1075_v55  ;;  %2559 = vmatprep.subr.mxu0 %v1073_v29 }
  0xf3   : > { %2686 = vmatpush3.msra.mxu1 %v1075_v55  ;;  %2560 = vmatpush3.msra.mxu0 %v1073_v29 }
  0xf4   : > { %2683 = vmatprep.subr.mxu1 %v1074_v28  ;;  %2641 = vmatprep.subr.mxu0 %v1958_v38 }
  0xf5   : > { %2687 = vmatpush3.msra.mxu1 %v1074_v28  ;;  %v1273_v28 = vld [vmem:[%s3346_s15 + $0x10] sm:$0xff] }
  0xf6   : > { %2684 = vmatprep.subr.mxu1 %v1073_v29 }
  0xf7   : > { %2688 = vmatpush3.msra.mxu1 %v1073_v29 }
 0x197   : > { %v2503_v58 = vpop.f32.mrf.mxu0 }
 0x198   : > { %v2510_v59 = vpop.f32.mrf.mxu1 }
 0x199   : > { %v497_v62 = vpop.f32.mrf.mxu0 }
 0x19a   : > { %2561 = vmatprep.mubr.msk.f32.mxu0 %vm1077_vm1, %v497_v62  ;;  %v578_v63 = vpop.f32.mrf.mxu1 }
 0x19b   : > { %2562 = vmatmul.mubr.msk.f32.vlgmr.msra.gmra.mxu0 %vm1077_vm1, %v2503_v58 }
 0x19c   : > { %2564 = vmatprep.mubr.msk.f32.mxu0 %vm1077_vm1, %v578_v63  ;;  %v2517_v3 = vpop.f32.mrf.mxu0  ;;  %2642 = vmatpush3.msra.mxu0 %v1958_v38  ;;  %v1276_v63 = vld [vmem:[%s3346_s15 + $0x28] sm:$0xff] }
 0x19d   : > { %2643 = vmatprep.subr.mxu0 %v1957_v9 }
 0x19e   : > { %v659_v4 = vpop.f32.mrf.mxu0  ;;  %2644 = vmatpush3.msra.mxu0 %v1957_v9  ;;  %v1280_v9 = vld [vmem:[%s3346_s15 + $0x48] sm:$0xff] }
 0x19f   : > { %2565 = vmatmul.mubr.msk.f32.gmra.mxu0 %vm1077_vm1, %v2510_v59  ;;  %2645 = vmatprep.subr.mxu0 %v1956_v39 }
 0x1a0   : > { %2567 = vmatprep.mubr.msk.f32.mxu0 %vm1077_vm1, %v659_v4  ;;  %v2524_v6 = vpop.f32.mrf.mxu1  ;;  %2646 = vmatpush3.msra.mxu0 %v1956_v39 }
 0x1a2   : > { %v740_v0 = vpop.f32.mrf.mxu1 }
 0x1a3   : > { %2568 = vmatmul.mubr.msk.f32.gmra.mxu0 %vm1077_vm1, %v2517_v3 }
 0x1a4   : > { %v2531_v14 = vpop.f32.mrf.mxu0  ;;  %2570 = vmatprep.mubr.msk.f32.mxu0 %vm1077_vm1, %v740_v0 }
 0x1a6   : > { %v821_v15 = vpop.f32.mrf.mxu0 }
 0x1a7   : > { %2571 = vmatmul.mubr.msk.f32.gmra.mxu0 %vm1077_vm1, %v2524_v6  ;;  %2573 = vmatprep.mubr.msk.f32.mxu1 %vm1077_vm1, %v821_v15 }
 0x1a8   : > { %v2538_v18 = vpop.f32.mrf.mxu1  ;;  %2574 = vmatmul.mubr.msk.f32.vlgmr.msra.gmra.mxu1 %vm1077_vm1, %v2531_v14  ;;  %v1275_v14 = vld [vmem:[%s3346_s15 + $0x20] sm:$0xff] }
 0x1aa   : > { %v902_v5 = vpop.f32.mrf.mxu1 }
 0x1ab   : > { %2576 = vmatprep.mubr.msk.f32.mxu1 %vm1077_vm1, %v902_v5 }
 0x1ac   : > { %v2545_v19 = vpop.f32.mrf.mxu0  ;;  %2577 = vmatmul.mubr.msk.f32.gmra.mxu1 %vm1077_vm1, %v2538_v18 }
 0x1ae   : > { %v983_v22 = vpop.f32.mrf.mxu0 }
 0x1af   : > { %2579 = vmatprep.mubr.msk.f32.mxu1 %vm1077_vm1, %v983_v22  ;;  %v1278_v22 = vld [vmem:[%s3346_s15 + $0x38] sm:$0xff] }
 0x1b0   : > { %v2552_v30 = vpop.f32.mrf.mxu1  ;;  %2580 = vmatmul.mubr.msk.f32.gmra.mxu1 %vm1077_vm1, %v2545_v19 }
 0x1b2   : > { %v1064_v31 = vpop.f32.mrf.mxu1 }
 0x1b3   : > { %2582 = vmatprep.mubr.msk.f32.mxu1 %vm1077_vm1, %v1064_v31 }
 0x1b4   : > { %2583 = vmatmul.mubr.msk.f32.gmra.mxu1 %vm1077_vm1, %v2552_v30 }
 0x1b5   : > { %2589 = vmatprep.mubr.msk.f32.mxu1 %vm328_vm0, %v3162_v60  ;;  %v1955_v60 = vld [vmem:[%s3522_s4 + $0x20] sm:$0xff] }
 0x1b6   : > { %2647 = vmatprep.subr.mxu0 %v1955_v60 }
 0x1b7   : > { %2648 = vmatpush3.msra.mxu0 %v1955_v60  ;;  %v1277_v60 = vld [vmem:[%s3346_s15 + $0x30] sm:$0xff] }
 0x1b8   : > { %2649 = vmatprep.subr.mxu0 %v1954_v40 }
 0x1b9   : > { %2650 = vmatpush3.msra.mxu0 %v1954_v40 }
 0x1ba   : > { %2651 = vmatprep.subr.mxu0 %v1953_v12 }
 0x1bb   : > { %2652 = vmatpush3.msra.mxu0 %v1953_v12 }
 0x25b   : > { %v2563_v49 = vpop.f32.mrf.mxu0 }
 0x25c   : > { %v1288_v50 = vadd.f32 %v2563_v49, %v1272_v45 }
 0x25d   : > { %v1192_v20 = vpop.f32.mrf.mxu0 }
 0x25e   : > { %v1304_v55 = vmax.f32 %v1288_v50, 0.0  ;;  %v1287_v56 = vadd.f32 %v1271_v16, %v1192_v20  ;;  %v1279_v16 = vld [vmem:[%s3346_s15 + $0x40] sm:$0xff] }
 0x25f   : > { %v2566_v24 = vpop.f32.mrf.mxu0 }
 0x260   : > { %v1320_v29 = vmin.f32 %v1304_v55, 6.0  ;;  %v1303_v58 = vmax.f32 %v1287_v56, 0.0  ;;  %v1290_v59 = vadd.f32 %v2566_v24, %v1274_v53 }
 0x261   : > { %v1202_v62 = vpop.f32.mrf.mxu0 }
 0x262   : > { %2771 = vtanh.f32 %v1320_v29  ;;  %v1319_v3 = vmin.f32 %v1303_v58, 6.0  ;;  %v1306_v4 = vmax.f32 %v1290_v59, 0.0  ;;  %v1289_v6 = vadd.f32 %v1273_v28, %v1202_v62  ;;  %v1282_v28 = vld [vmem:[%s3346_s15 + $0x58] sm:$0xff] }
 0x263   : > { %v2569_v0 = vpop.f32.mrf.mxu0 }
 0x264   : > { %2773 = vtanh.f32 %v1319_v3  ;;  %v1322_v15 = vmin.f32 %v1306_v4, 6.0  ;;  %v1305_v18 = vmax.f32 %v1289_v6, 0.0  ;;  %v1292_v5 = vadd.f32 %v2569_v0, %v1276_v63  ;;  %v1281_v3 = vld [vmem:[%s3346_s15 + $0x50] sm:$0xff] }
 0x265   : > { %v1212_v19 = vpop.f32.mrf.mxu0 }
 0x266   : > { %2775 = vtanh.f32 %v1322_v15  ;;  %v1321_v30 = vmin.f32 %v1305_v18, 6.0  ;;  %v1308_v31 = vmax.f32 %v1292_v5, 0.0  ;;  %v1291_v38 = vadd.f32 %v1275_v14, %v1212_v19  ;;  %v1284_v18 = vld [vmem:[%s3346_s15 + $0x68] sm:$0xff] }
 0x267   : > { %v2572_v39 = vpop.f32.mrf.mxu0 }
 0x268   : > { %2777 = vtanh.f32 %v1321_v30  ;;  %v1324_v40 = vmin.f32 %v1308_v31, 6.0  ;;  %v1307_v12 = vmax.f32 %v1291_v38, 0.0  ;;  %v1294_v45 = vadd.f32 %v2572_v39, %v1278_v22  ;;  %v2575_v49 = vpop.f32.mrf.mxu1  ;;  %v1283_v38 = vld [vmem:[%s3346_s15 + $0x60] sm:$0xff] }
 0x269   : > { %v1222_v50 = vpop.f32.mrf.mxu0  ;;  %v1296_v20 = vadd.f32 %v2575_v49, %v1280_v9 }
 0x26a   : > { %2779 = vtanh.f32 %v1324_v40  ;;  %v1323_v53 = vmin.f32 %v1307_v12, 6.0  ;;  %v1310_v55 = vmax.f32 %v1294_v45, 0.0  ;;  %v1293_v56 = vadd.f32 %v1277_v60, %v1222_v50  ;;  %v1232_v24 = vpop.f32.mrf.mxu1  ;;  %v1286_v45 = vld [vmem:[%s3346_s15 + $0x78] sm:$0xff] }
 0x26b   : > { %v1312_v29 = vmax.f32 %v1296_v20, 0.0  ;;  %v1295_v58 = vadd.f32 %v1279_v16, %v1232_v24 }
 0x26c   : > { %2781 = vtanh.f32 %v1323_v53  ;;  %v1326_v59 = vmin.f32 %v1310_v55, 6.0  ;;  %v1309_v62 = vmax.f32 %v1293_v56, 0.0  ;;  %v2578_v63 = vpop.f32.mrf.mxu1  ;;  %v1285_v55 = vld [vmem:[%s3346_s15 + $0x70] sm:$0xff] }
 0x26d   : > { %v1311_v4 = vmax.f32 %v1295_v58, 0.0  ;;  %v1298_v6 = vadd.f32 %v2578_v63, %v1282_v28  ;;  %v1328_v14 = vmin.f32 %v1312_v29, 6.0 }
 0x26e   : > { %2783 = vtanh.f32 %v1326_v59  ;;  %v1325_v0 = vmin.f32 %v1309_v62, 6.0  ;;  %v1242_v15 = vpop.f32.mrf.mxu1 }
 0x26f   : > { %v2772_v5 = vpop.eup %2771  ;;  %v1314_v19 = vmax.f32 %v1298_v6, 0.0  ;;  %v1297_v22 = vadd.f32 %v1281_v3, %v1242_v15  ;;  %v1327_v30 = vmin.f32 %v1311_v4, 6.0 }
 0x270   : > { %2785 = vtanh.f32 %v1325_v0  ;;  %2585 = vmatprep.subr.mxu1 %v2772_v5  ;;  %v2581_v31 = vpop.f32.mrf.mxu1 }
 0x271   : > { %v2774_v9 = vpop.eup %2773  ;;  %v1313_v39 = vmax.f32 %v1297_v22, 0.0  ;;  %2586 = vmatpush3.msra.mxu1 %v2772_v5  ;;  %v1300_v60 = vadd.f32 %v2581_v31, %v1284_v18  ;;  %2787 = vtanh.f32 %v1328_v14  ;;  %v1330_v40 = vmin.f32 %v1314_v19, 6.0 }
 0x272   : > { %2587 = vmatprep.subr.mxu1 %v2774_v9  ;;  %v1252_v12 = vpop.f32.mrf.mxu1  ;;  %2789 = vtanh.f32 %v1327_v30 }
 0x273   : > { %v2776_v49 = vpop.eup %2775  ;;  %v1316_v16 = vmax.f32 %v1300_v60, 0.0  ;;  %2588 = vmatpush3.msra.mxu1 %v2774_v9  ;;  %v1299_v50 = vadd.f32 %v1283_v38, %v1252_v12  ;;  %v1329_v20 = vmin.f32 %v1313_v39, 6.0  ;;  %2791 = vtanh.f32 %v1330_v40 }
 0x274   : > { %2590 = vmatmul.mubr.msk.f32.vlgmr.msra.gmra.mxu1 %vm328_vm0, %v3172_v7  ;;  %2592 = vmatprep.subr.mxu1 %v2776_v49  ;;  %v2584_v53 = vpop.f32.mrf.mxu1 }
 0x275   : > { %v2778_v56 = vpop.eup %2777  ;;  %v1315_v24 = vmax.f32 %v1299_v50, 0.0  ;;  %2593 = vmatpush3.msra.mxu1 %v2776_v49  ;;  %2596 = vmatprep.mubr.msk.f32.mxu1 %vm328_vm0, %v3165_v61  ;;  %v1302_v28 = vadd.f32 %v2584_v53, %v1286_v45  ;;  %v1332_v29 = vmin.f32 %v1316_v16, 6.0  ;;  %2793 = vtanh.f32 %v1329_v20 }
 0x276   : > { %2594 = vmatprep.subr.mxu1 %v2778_v56  ;;  %v1262_v58 = vpop.f32.mrf.mxu1 }
 0x277   : > { %v2780_v59 = vpop.eup %2779  ;;  %v1318_v62 = vmax.f32 %v1302_v28, 0.0  ;;  %2595 = vmatpush3.msra.mxu1 %v2778_v56  ;;  %v1301_v63 = vadd.f32 %v1285_v55, %v1262_v58  ;;  %v1331_v7 = vmin.f32 %v1315_v24, 6.0  ;;  %2795 = vtanh.f32 %v1332_v29 }
 0x278   : > { %2597 = vmatmul.mubr.msk.f32.vlgmr.msra.gmra.mxu1 %vm328_vm0, %v3175_v1  ;;  %2599 = vmatprep.subr.mxu1 %v2780_v59 }
 0x279   : > { %v2782_v3 = vpop.eup %2781  ;;  %v1317_v4 = vmax.f32 %v1301_v63, 0.0  ;;  %2600 = vmatpush3.msra.mxu1 %v2780_v59  ;;  %2603 = vmatprep.mubr.msk.f32.mxu1 %vm328_vm0, %v3193_v23  ;;  %v1334_v61 = vmin.f32 %v1318_v62, 6.0  ;;  %2797 = vtanh.f32 %v1331_v7 }
 0x27a   : > { %2601 = vmatprep.subr.mxu1 %v2782_v3 }
 0x27b   : > { %v2784_v6 = vpop.eup %2783  ;;  %2602 = vmatpush3.msra.mxu1 %v2782_v3  ;;  %v1333_v0 = vmin.f32 %v1317_v4, 6.0  ;;  %2799 = vtanh.f32 %v1334_v61 }
 0x27c   : > { %2604 = vmatmul.mubr.msk.f32.vlgmr.msra.gmra.mxu1 %vm328_vm0, %v3198_v26  ;;  %2606 = vmatprep.subr.mxu1 %v2784_v6 }
 0x27d   : > { %v2786_v14 = vpop.eup %2785  ;;  %2607 = vmatpush3.msra.mxu1 %v2784_v6  ;;  %2610 = vmatprep.mubr.msk.f32.mxu1 %vm328_vm0, %v3215_v41  ;;  %2801 = vtanh.f32 %v1333_v0 }
 0x27e   : > { %2608 = vmatprep.subr.mxu1 %v2786_v14  ;;  %v2788_v1 = vpop.eup %2787 }
 0x27f   : > { %2609 = vmatpush3.msra.mxu1 %v2786_v14  ;;  %v2790_v23 = vpop.eup %2789 }
 0x280   : > { %2611 = vmatmul.mubr.msk.f32.vlgmr.msra.gmra.mxu1 %vm328_vm0, %v3223_v43  ;;  %2613 = vmatprep.subr.mxu1 %v2788_v1  ;;  %v2792_v26 = vpop.eup %2791 }
 0x281   : > { %2614 = vmatpush3.msra.mxu1 %v2788_v1  ;;  %2617 = vmatprep.mubr.msk.f32.mxu1 %vm328_vm0, %v3235_v13 }
 0x282   : > { %2615 = vmatprep.subr.mxu1 %v2790_v23  ;;  %v2794_v41 = vpop.eup %2793 }
 0x283   : > { %2616 = vmatpush3.msra.mxu1 %v2790_v23 }
 0x284   : > { %2618 = vmatmul.mubr.msk.f32.vlgmr.msra.gmra.mxu1 %vm328_vm0, %v3242_v47  ;;  %2620 = vmatprep.subr.mxu1 %v2792_v26  ;;  %v2796_v43 = vpop.eup %2795 }
 0x285   : > { %2621 = vmatpush3.msra.mxu1 %v2792_v26  ;;  %2624 = vmatprep.mubr.msk.f32.mxu1 %vm328_vm0, %v3255_v17 }
 0x286   : > { %2622 = vmatprep.subr.mxu1 %v2794_v41  ;;  %v2798_v13 = vpop.eup %2797 }
 0x287   : > { %2623 = vmatpush3.msra.mxu1 %v2794_v41 }
 0x288   : > { %2625 = vmatmul.mubr.msk.f32.vlgmr.msra.gmra.mxu1 %vm328_vm0, %v3262_v51  ;;  %2627 = vmatprep.subr.mxu1 %v2796_v43  ;;  %v2800_v47 = vpop.eup %2799  ;;  %v1952_v51 = vld [vmem:[%s3522_s4 + $0x8] sm:$0xff] }
 0x289   : > { %2628 = vmatpush3.msra.mxu1 %v2796_v43  ;;  %2631 = vmatprep.mubr.msk.f32.mxu1 %vm328_vm0, %v3274_v54  ;;  %v1951_v54 = vld [vmem:[%s3522_s4] sm:$0xff] }
 0x28a   : > { %2629 = vmatprep.subr.mxu1 %v2798_v13  ;;  %v2802_v17 = vpop.eup %2801  ;;  %2653 = vmatprep.subr.mxu0 %v1952_v51 }
 0x28b   : > { %2630 = vmatpush3.msra.mxu1 %v2798_v13  ;;  %2654 = vmatpush3.msra.mxu0 %v1952_v51 }
 0x28c   : > { %2632 = vmatmul.mubr.msk.f32.vlgmr.msra.gmra.mxu1 %vm328_vm0, %v3278_v21  ;;  %2634 = vmatprep.subr.mxu1 %v2800_v47 }
 0x28d   : > { %2635 = vmatpush3.msra.mxu1 %v2800_v47  ;;  %2638 = vmatprep.mubr.msk.f32.mxu1 %vm328_vm0, %v3290_v25 }
 0x28e   : > { %2636 = vmatprep.subr.mxu1 %v2802_v17  ;;  %2655 = vmatprep.subr.mxu0 %v1951_v54 }
 0x28f   : > { %2637 = vmatpush3.msra.mxu1 %v2802_v17  ;;  %2656 = vmatpush3.msra.mxu0 %v1951_v54 }
 0x290   : > { %2639 = vmatmul.mubr.msk.f32.vlgmr.msra.gmra.mxu1 %vm328_vm0, %v3293_v57 }
 0x334   : > { %v2591_v21 = vpop.f32.mrf.mxu1 }
 0x336   : > { %v1417_v25 = vpop.f32.mrf.mxu1 }
 0x337   : > { %2657 = vmatprep.mubr.msk.f32.mxu0 %vm1959_vm2, %v1417_v25 }
 0x338   : > { %v2598_v15 = vpop.f32.mrf.mxu1  ;;  %2658 = vmatmul.mubr.msk.f32.vlgmr.msra.gmra.mxu0 %vm1959_vm2, %v2591_v21 }
 0x33a   : > { %v1492_v57 = vpop.f32.mrf.mxu1 }
 0x33b   : > { %2660 = vmatprep.mubr.msk.f32.mxu0 %vm1959_vm2, %v1492_v57 }
 0x33c   : > { %v2605_v18 = vpop.f32.mrf.mxu1  ;;  %2661 = vmatmul.mubr.msk.f32.gmra.mxu0 %vm1959_vm2, %v2598_v15 }
 0x33e   : > { %v1567_v5 = vpop.f32.mrf.mxu1 }
 0x33f   : > { %2663 = vmatprep.mubr.msk.f32.mxu0 %vm1959_vm2, %v1567_v5 }
 0x340   : > { %v2612_v19 = vpop.f32.mrf.mxu1  ;;  %2664 = vmatmul.mubr.msk.f32.gmra.mxu0 %vm1959_vm2, %v2605_v18 }
 0x342   : > { %v1642_v22 = vpop.f32.mrf.mxu1 }
 0x343   : > { %2666 = vmatprep.mubr.msk.f32.mxu0 %vm1959_vm2, %v1642_v22 }
 0x344   : > { %v2619_v30 = vpop.f32.mrf.mxu1  ;;  %2667 = vmatmul.mubr.msk.f32.gmra.mxu0 %vm1959_vm2, %v2612_v19 }
 0x346   : > { %v1717_v31 = vpop.f32.mrf.mxu1 }
 0x347   : > { %2669 = vmatprep.mubr.msk.f32.mxu0 %vm1959_vm2, %v1717_v31 }
 0x348   : > { %v2626_v38 = vpop.f32.mrf.mxu1  ;;  %2670 = vmatmul.mubr.msk.f32.gmra.mxu0 %vm1959_vm2, %v2619_v30 }
 0x34a   : > { %v1792_v9 = vpop.f32.mrf.mxu1 }
 0x34b   : > { %2672 = vmatprep.mubr.msk.f32.mxu0 %vm1959_vm2, %v1792_v9 }
 0x34c   : > { %v2633_v39 = vpop.f32.mrf.mxu1  ;;  %2673 = vmatmul.mubr.msk.f32.gmra.mxu0 %vm1959_vm2, %v2626_v38 }
 0x34e   : > { %v1867_v60 = vpop.f32.mrf.mxu1 }
 0x34f   : > { %2675 = vmatprep.mubr.msk.f32.mxu0 %vm1959_vm2, %v1867_v60 }
 0x350   : > { %v2640_v40 = vpop.f32.mrf.mxu1  ;;  %2676 = vmatmul.mubr.msk.f32.gmra.mxu0 %vm1959_vm2, %v2633_v39 }
 0x352   : > { %v1942_v12 = vpop.f32.mrf.mxu1 }
 0x353   : > { %2678 = vmatprep.mubr.msk.f32.mxu0 %vm1959_vm2, %v1942_v12 }
 0x354   : > { %2679 = vmatmul.mubr.msk.f32.gmra.mxu0 %vm1959_vm2, %v2640_v40 }
 0x3f8   : > { %v2659_v45 = vpop.f32.mrf.mxu0 }
 0x3f9   : > { %v2154_v49 = vadd.f32 %v2659_v45, %v3134_v32 }
 0x3fa   : > { %v2074_v16 = vpop.f32.mrf.mxu0 }
 0x3fb   : > { %2170 = vst.msk [vmem:[%s3419_s7 + $0x8] sm:$0xff] %vm1077_vm1, %v2154_v49  ;;  %v2153_v50 = vadd.f32 %v2074_v16, %v3138_v33 }
 0x3fc   : > { %v2662_v20 = vpop.f32.mrf.mxu0 }
 0x3fd   : > { %2169 = vst.msk [vmem:[%s3419_s7] sm:$0xff] %vm1077_vm1, %v2153_v50  ;;  %v2156_v32 = vadd.f32 %v2662_v20, %v3141_v34 }
 0x3fe   : > { %v2084_v53 = vpop.f32.mrf.mxu0 }
 0x3ff   : > { %2172 = vst.msk [vmem:[%s3419_s7 + $0x18] sm:$0xff] %vm1077_vm1, %v2156_v32  ;;  %v2155_v55 = vadd.f32 %v2084_v53, %v3148_v35 }
 0x400   : > { %v2665_v56 = vpop.f32.mrf.mxu0 }
 0x401   : > { %2171 = vst.msk [vmem:[%s3419_s7 + $0x10] sm:$0xff] %vm1077_vm1, %v2155_v55  ;;  %v2158_v24 = vadd.f32 %v2665_v56, %v3154_v36 }
 0x402   : > { %v2094_v28 = vpop.f32.mrf.mxu0 }
 0x403   : > { %2174 = vst.msk [vmem:[%s3419_s7 + $0x28] sm:$0xff] %vm1077_vm1, %v2158_v24  ;;  %v2157_v33 = vadd.f32 %v2094_v28, %v3178_v10 }
 0x404   : > { %v2668_v29 = vpop.f32.mrf.mxu0 }
 0x405   : > { %2173 = vst.msk [vmem:[%s3419_s7 + $0x20] sm:$0xff] %vm1077_vm1, %v2157_v33  ;;  %v2160_v34 = vadd.f32 %v2668_v29, %v3158_v37 }
 0x406   : > { %v2104_v58 = vpop.f32.mrf.mxu0 }
 0x407   : > { %2176 = vst.msk [vmem:[%s3419_s7 + $0x38] sm:$0xff] %vm1077_vm1, %v2160_v34  ;;  %v2159_v35 = vadd.f32 %v2104_v58, %v3183_v11 }
 0x408   : > { %v2671_v59 = vpop.f32.mrf.mxu0 }
 0x409   : > { %2175 = vst.msk [vmem:[%s3419_s7 + $0x30] sm:$0xff] %vm1077_vm1, %v2159_v35  ;;  %v2162_v36 = vadd.f32 %v2671_v59, %v3189_v2 }
 0x40a   : > { %v2114_v10 = vpop.f32.mrf.mxu0 }
 0x40b   : > { %2178 = vst.msk [vmem:[%s3419_s7 + $0x48] sm:$0xff] %vm1077_vm1, %v2162_v36  ;;  %v2161_v62 = vadd.f32 %v2114_v10, %v3208_v8 }
 0x40c   : > { %v2674_v37 = vpop.f32.mrf.mxu0 }
 0x40d   : > { %2177 = vst.msk [vmem:[%s3419_s7 + $0x40] sm:$0xff] %vm1077_vm1, %v2161_v62  ;;  %v2164_v63 = vadd.f32 %v2674_v37, %v3202_v27 }
 0x40e   : > { %v2124_v11 = vpop.f32.mrf.mxu0 }
 0x40f   : > { %2180 = vst.msk [vmem:[%s3419_s7 + $0x58] sm:$0xff] %vm1077_vm1, %v2164_v63  ;;  %v2163_v7 = vadd.f32 %v2124_v11, %v3229_v44 }
 0x410   : > { %v2677_v2 = vpop.f32.mrf.mxu0 }
 0x411   : > { %2179 = vst.msk [vmem:[%s3419_s7 + $0x50] sm:$0xff] %vm1077_vm1, %v2163_v7  ;;  %v2166_v3 = vadd.f32 %v2677_v2, %v3219_v42 }
 0x412   : > { %v2134_v8 = vpop.f32.mrf.mxu0 }
 0x413   : > { %2182 = vst.msk [vmem:[%s3419_s7 + $0x68] sm:$0xff] %vm1077_vm1, %v2166_v3  ;;  %v2165_v4 = vadd.f32 %v2134_v8, %v3249_v48 }
 0x414   : > { %v2680_v27 = vpop.f32.mrf.mxu0 }
 0x415   : > { %2181 = vst.msk [vmem:[%s3419_s7 + $0x60] sm:$0xff] %vm1077_vm1, %v2165_v4  ;;  %v2168_v44 = vadd.f32 %v2680_v27, %v3239_v46 }
 0x416   : > { %v2144_v61 = vpop.f32.mrf.mxu0 }
 0x417   : > { %2184 = vst.msk [vmem:[%s3419_s7 + $0x78] sm:$0xff] %vm1077_vm1, %v2168_v44  ;;  %v2167_v42 = vadd.f32 %v2144_v61, %v3269_v52 }
 0x419   : > { %2183 = vst.msk [vmem:[%s3419_s7 + $0x70] sm:$0xff] %vm1077_vm1, %v2167_v42 }
 0x41a   : > { %2844 = shalt.err (!%p2841_p0)
}
 0x41b   : > { %s2845_s15 = scalar_lea.hbm %s3468_s13, 2048  ;;  %s2849_s16 = scalar_lea.hbm %s3523_s5, 4096 }
 0x41c   : > { %p2846_p2 = scmp.ne.s32.totalorder %s3468_s13, %s2845_s15  ;;  %p2850_p3 = scmp.lt.s32.totalorder %s3468_s13, %s3523_s5 }
 0x41d   : > { %p2851_p6 = scmp.lt.s32.totalorder %s2849_s16, %s2845_s15 }
 0x41e   : > { %p2847_p9 = pnand %p2846_p2, %p3532_p13 }
 0x41f   : > { %p2852_p11 = por %p2851_p6, %p2850_p3 }
 0x420   : > { %p2848_p1 = pneg %p2847_p9 }
 0x422   : > { %p2853_p12 = pnand %p2852_p11, %p2848_p1 }
 0x424   : > { %2856 = shalt.err (!%p2853_p12)
}
 0x425   : > { %s2901_s25 = smov 128   ;;  %s2902_s10 = smov 8  }
 0x426   : > { %2691 = dma.vmem_to_hbm [thread:$0]  (%p3532_p13), %s3470_s9, 2048, %s3468_s13, %s2186_s22, %s2901_s25, %s2901_s25, %s2902_s10  }
 0x427 PF: > { %s2215_s11 = sand.u32 1, %s2883_s18   ;;  %p3533_p4 = scmp.ne.s32.totalorder %s3529_s6, 0 }
 0x428   : > { %p3534_p5 = scmp.ge.s32.totalorder %s2895_s21, 2  ;;  %s2216_s17 = scalar_lea.sflag [#allocation4], %s2215_s11 }
 0x42a   : > { %p2698_p7 = pnand %p3534_p5, %p3533_p4 }
 0x42c   : > { %p2699_p8 = pneg %p2698_p7 }
 0x42e   : > { %2878 = dma.done.wait (%p2699_p8), %s2216_s17, 2048  }
 0x42f   : > { %2880 = vsyncadd (%p2699_p8), %s2216_s17, 4294965248  ;;  %p18_p10 = scmp.ge.s32.totalorder %s2958_s24, 4   ;;  %s3535_s18 = smov %s2887_s19 }
 0x430   : > { %s3536_s19 = smov %s2891_s20  ;;  %s3537_s20 = smov %s2970_s27 }
 0x431   : > { %s3538_s21 = smov %s2958_s24  ;;  %20 = sbr.rel (!%p18_p10) target bundleno = 5 (0x5), region = 91 }
 0x436   :  { %2221 = vsyncpa [#allocation3], 1 }
 0x437   :  { %2223 = vsyncpa [#allocation3 + $0x1], 1 }
 0x438   :  { %2224 = vsyncpa [#allocation4], 1 }
 0x439   :  { %2226 = vsyncpa [#allocation4 + $0x1], 1 }

</bundles_post_ra>
